<compile_context>
chip_gen: v6e
topology: v6e:2x2x1
jax: 0.10.0
libtpu: 0.0.40
codegen_flags: <defaults>
</compile_context>

<pallas_src>
import functools

import jax
import jax.numpy as jnp
from jax.experimental import pallas as pl
from jax.experimental.pallas import tpu as pltpu


def _round_up(n, m):
    return (n + m - 1) // m * m


def _default_compute_dtype():
    """bf16 matmul operands on v6e/v7x, f32 on v5e/older/unknown."""
    try:
        kind = jax.devices()[0].device_kind.lower()
    except Exception:
        return jnp.dtype(jnp.float32)
    if ("v6" in kind) or ("v7" in kind) or ("tpu7" in kind):
        return jnp.dtype(jnp.bfloat16)
    return jnp.dtype(jnp.float32)


def _choose_block_b(B, D_in, requested, vmem_budget_bytes):
    """Pick the batch (lane) tile: big to amortize per-grid-step overhead,
    clamped to the padded batch and to a conservative VMEM budget
    (double-buffered x tile + output tile) so it also fits v7x's smaller VMEM."""
    if requested is not None:
        tb = min(requested, _round_up(B, 128))
        return max(128, _round_up(tb, 128))
    tb = 2048
    bytes_per_row = 2 * (D_in * 4) + 2 * 4          # 2 x-buffers + 2 out-buffers
    vmem_cap = max(128, (vmem_budget_bytes // bytes_per_row) // 128 * 128)
    tb = min(tb, vmem_cap)
    tb = min(tb, _round_up(B, 128))
    return max(128, tb)


def _ae_kernel(n_layers, out_dims, bias_offsets, compute_dtype, xt_ref, *refs):
    """Fused autoencoder forward + per-row MSE for one batch (lane) tile.

    refs = (wT_0, ..., wT_{n_layers-1}, packed_bias, out_ref)
      xt_ref:      (D_in, TB)  f32  batch tile, batch on lanes
      wT_l:        (out_l, in_l)    transposed weights, compute_dtype
      packed_bias: (sum(pad8(out_l)), 1) f32, 8-aligned sublane segments
      out_ref:     (1, TB)     lane-dense per-row MSE
    """
    out_ref = refs[-1]
    b_ref = refs[-2]
    w_refs = refs[:n_layers]

    x = xt_ref[...]                                   # (D_in, TB) f32
    h = x
    for l in range(n_layers):
        w_t = w_refs[l][...]                          # (out_l, in_l)
        lhs = h if h.dtype == compute_dtype else h.astype(compute_dtype)
        pre = jnp.dot(w_t, lhs, preferred_element_type=jnp.float32)  # (out_l, TB)
        off = bias_offsets[l]
        b = b_ref[off:off + out_dims[l], :]           # (out_l, 1) aligned static slice
        pre = pre + b                                 # broadcast along lanes
        # sigmoid(x) = 0.5*(tanh(x/2)+1): single EUP transcendental per element
        h = 0.5 * (jnp.tanh(0.5 * pre) + 1.0)

    diff = h - x                                      # (D_in, TB) f32
    mse = jnp.mean(diff * diff, axis=0)               # sublane reduce -> (TB,)
    out_ref[...] = mse[None, :]                       # (1, TB) lane-dense store


def ae_forward(x, weights, biases, *, block_b=None, compute_dtype=None,
               vmem_budget_bytes=8 << 20, core_parallel=False):
    """Run the fused AE kernel.

    x:       (B, D_in) array (cast to f32, matching `input_tensor.float()`)
    weights: list of (in_dim, out_dim) arrays (encoder layers then decoder layers)
    biases:  list of (out_dim,) arrays
    returns: (B,) reconstruction error per sample (float32)
    """
    B, D_in = x.shape
    n_layers = len(weights)
    assert len(biases) == n_layers
    assert weights[-1].shape[1] == D_in, "decoder must map back to input size"

    if compute_dtype is None:
        compute_dtype = _default_compute_dtype()
    compute_dtype = jnp.dtype(compute_dtype)

    tb = _choose_block_b(B, D_in, block_b, vmem_budget_bytes)
    num_tiles = pl.cdiv(B, tb)
    b_pad = num_tiles * tb

    # Batch on the LANE axis: present x transposed as (D_in, B_pad).
    xt = x.astype(jnp.float32).T
    if b_pad != B:
        xt = jnp.pad(xt, ((0, 0), (0, b_pad - B)))

    # Pack biases column-wise with each layer segment padded to 8 sublanes so
    # in-kernel slices start at aligned sublane offsets.
    out_dims = tuple(int(w.shape[1]) for w in weights)
    pad_dims = tuple(_round_up(d, 8) for d in out_dims)
    bias_offsets = tuple(int(sum(pad_dims[:l])) for l in range(n_layers))
    segs = []
    for b, d, pd in zip(biases, out_dims, pad_dims):
        seg = jnp.zeros((pd, 1), jnp.float32).at[:d, 0].set(
            b.reshape(-1).astype(jnp.float32))
        segs.append(seg)
    b_packed = jnp.concatenate(segs, axis=0)

    # Transposed weights (out_l, in_l), resident in VMEM (constant block index).
    wt_list = [w.T.astype(compute_dtype) for w in weights]

    in_specs = [pl.BlockSpec((D_in, tb), lambda i: (0, i))]
    for wt in wt_list:
        in_specs.append(pl.BlockSpec(wt.shape, lambda i: (0, 0)))
    in_specs.append(pl.BlockSpec(b_packed.shape, lambda i: (0, 0)))

    # "parallel" is free on single-TC chips; on v7x, core_parallel=True shards
    # the batch tiles across the 2 TensorCores.
    sem = pltpu.CORE_PARALLEL if core_parallel else "parallel"

    out = pl.pallas_call(
        functools.partial(_ae_kernel, n_layers, out_dims, bias_offsets,
                          compute_dtype),
        out_shape=jax.ShapeDtypeStruct((1, b_pad), jnp.float32),
        grid=(num_tiles,),
        in_specs=in_specs,
        out_specs=pl.BlockSpec((1, tb), lambda i: (0, i)),
        compiler_params=pltpu.CompilerParams(dimension_semantics=(sem,)),
    )(xt, *wt_list, b_packed)

    return out.reshape(b_pad)[:B]


def make_params(key, input_size, hidden_dims, latent_dim):
    """Deterministic parameter init mirroring the PyTorch module's shapes.

    Encoder architecture: [input_size] + hidden_dims + [latent_dim]
    Decoder architecture: [latent_dim] + hidden_dims + [input_size]
    Weights are stored as (in_dim, out_dim) (i.e. PyTorch W transposed).
    """
    enc_arch = [input_size] + list(hidden_dims) + [latent_dim]
    dec_arch = [latent_dim] + list(hidden_dims) + [input_size]

    weights, biases = [], []
    for arch in (enc_arch, dec_arch):
        for in_dim, out_dim in zip(arch[:-1], arch[1:]):
            key, kw, kb = jax.random.split(key, 3)
            bound = 1.0 / jnp.sqrt(jnp.float32(in_dim))  # nn.Linear default range
            w = jax.random.uniform(kw, (in_dim, out_dim), jnp.float32, -bound, bound)
            b = jax.random.uniform(kb, (out_dim,), jnp.float32, -bound, bound)
            weights.append(w)
            biases.append(b)
    return weights, biases


def reference_forward(x, weights, biases, compute_dtype=jnp.float32):
    """Pure-JAX reference of the same forward pass (matmul operands cast to
    `compute_dtype`, accumulation/sigmoid/MSE in f32, like the kernel)."""
    x32 = x.astype(jnp.float32)
    h = x32
    for w, b in zip(weights, biases):
        pre = jnp.dot(h.astype(compute_dtype), w.astype(compute_dtype),
                      preferred_element_type=jnp.float32) + b.astype(jnp.float32)
        h = jax.nn.sigmoid(pre)
    return jnp.mean((h - x32) ** 2, axis=1)


if __name__ == "__main__":
    # Small shapes consistent with the module: 1-D feature vectors per sample.
    batch = 300
    input_size = 16
    hidden_dims = [32]
    latent_dim = 8

    key = jax.random.PRNGKey(0)
    key, kx = jax.random.split(key)
    x = jax.random.normal(kx, (batch, input_size), jnp.float32)

    weights, biases = make_params(key, input_size, hidden_dims, latent_dim)

    cd = _default_compute_dtype()
    tol = 1e-4 if cd == jnp.dtype(jnp.float32) else 5e-3

    # Single-tile path (auto tile = padded batch, no over-padding).
    out = jax.block_until_ready(ae_forward(x, weights, biases))
    ref = reference_forward(x, weights, biases, compute_dtype=cd)
    assert out.shape == (batch,), out.shape
    assert jnp.allclose(out, ref, atol=tol, rtol=tol), (out, ref)

    # Multi-tile path: forces a >1-step pipelined grid plus batch padding.
    batch2 = 1000
    key, kx2 = jax.random.split(key)
    x2 = jax.random.normal(kx2, (batch2, input_size), jnp.float32)
    out2 = jax.block_until_ready(ae_forward(x2, weights, biases, block_b=256))
    ref2 = reference_forward(x2, weights, biases, compute_dtype=cd)
    assert out2.shape == (batch2,), out2.shape
    assert jnp.allclose(out2, ref2, atol=tol, rtol=tol), (out2, ref2)

    print("KERNEL_OK")
</pallas_src>

<mosaic_0001>
module attributes {stable_mosaic.version = 11 : i64} {
  func.func @_ae_kernel(%arg0: i32, %arg1: memref<16x384xf32, #tpu.memory_space<vmem>>, %arg2: memref<32x16xf32, #tpu.memory_space<vmem>>, %arg3: memref<8x32xf32, #tpu.memory_space<vmem>>, %arg4: memref<32x8xf32, #tpu.memory_space<vmem>>, %arg5: memref<16x32xf32, #tpu.memory_space<vmem>>, %arg6: memref<88x1xf32, #tpu.memory_space<vmem>>, %arg7: memref<1x384xf32, #tpu.memory_space<vmem>>) attributes {dimension_semantics = [#tpu.dimension_semantics<parallel>], iteration_bounds = array<i64: 1>, scalar_prefetch = 0 : i64, scratch_operands = 0 : i64, tpu.core_type = #tpu.core_type<tc>, window_params = [{transform_indices = @transform_0, window_bounds = array<i64: 16, 384>}, {pipeline_mode = #tpu.pipeline_mode<synchronous>, transform_indices = @transform_1, window_bounds = array<i64: 32, 16>}, {pipeline_mode = #tpu.pipeline_mode<synchronous>, transform_indices = @transform_2, window_bounds = array<i64: 8, 32>}, {pipeline_mode = #tpu.pipeline_mode<synchronous>, transform_indices = @transform_3, window_bounds = array<i64: 32, 8>}, {pipeline_mode = #tpu.pipeline_mode<synchronous>, transform_indices = @transform_4, window_bounds = array<i64: 16, 32>}, {pipeline_mode = #tpu.pipeline_mode<synchronous>, transform_indices = @transform_5, window_bounds = array<i64: 88, 1>}, {transform_indices = @transform_6, window_bounds = array<i64: 1, 384>}]} {
    %c0 = arith.constant 0 : index
    %c0_0 = arith.constant 0 : index
    %0 = vector.load %arg1[%c0, %c0_0] : memref<16x384xf32, #tpu.memory_space<vmem>>, vector<16x384xf32>
    %c0_1 = arith.constant 0 : index
    %c0_2 = arith.constant 0 : index
    %1 = vector.load %arg2[%c0_1, %c0_2] : memref<32x16xf32, #tpu.memory_space<vmem>>, vector<32x16xf32>
    %cst = arith.constant dense<0.000000e+00> : vector<32x384xf32>
    %2 = tpu.matmul %1, %0, %cst {dimension_numbers = #tpu.dot_dimension_numbers<[1], [0], [0], [1], [0, 0, 1, 1], [], []>} : vector<32x16xf32>, vector<16x384xf32>, vector<32x384xf32> -> vector<32x384xf32>
    %c0_3 = arith.constant 0 : index
    %c0_4 = arith.constant 0 : index
    %3 = vector.load %arg6[%c0_3, %c0_4] : memref<88x1xf32, #tpu.memory_space<vmem>>, vector<32x1xf32>
    %4 = vector.broadcast %3 : vector<32x1xf32> to vector<32x384xf32>
    %5 = arith.addf %2, %4 : vector<32x384xf32>
    %cst_5 = arith.constant 5.000000e-01 : f32
    %6 = vector.broadcast %cst_5 : f32 to vector<32x384xf32>
    %7 = arith.mulf %6, %5 : vector<32x384xf32>
    %8 = math.tanh %7 : vector<32x384xf32>
    %cst_6 = arith.constant 1.000000e+00 : f32
    %9 = vector.broadcast %cst_6 : f32 to vector<32x384xf32>
    %10 = arith.addf %8, %9 : vector<32x384xf32>
    %cst_7 = arith.constant 5.000000e-01 : f32
    %11 = vector.broadcast %cst_7 : f32 to vector<32x384xf32>
    %12 = arith.mulf %11, %10 : vector<32x384xf32>
    %c0_8 = arith.constant 0 : index
    %c0_9 = arith.constant 0 : index
    %13 = vector.load %arg3[%c0_8, %c0_9] : memref<8x32xf32, #tpu.memory_space<vmem>>, vector<8x32xf32>
    %cst_10 = arith.constant dense<0.000000e+00> : vector<8x384xf32>
    %14 = tpu.matmul %13, %12, %cst_10 {dimension_numbers = #tpu.dot_dimension_numbers<[1], [0], [0], [1], [0, 0, 1, 1], [], []>} : vector<8x32xf32>, vector<32x384xf32>, vector<8x384xf32> -> vector<8x384xf32>
    %c32 = arith.constant 32 : index
    %c0_11 = arith.constant 0 : index
    %15 = vector.load %arg6[%c32, %c0_11] : memref<88x1xf32, #tpu.memory_space<vmem>>, vector<8x1xf32>
    %16 = vector.broadcast %15 : vector<8x1xf32> to vector<8x384xf32>
    %17 = arith.addf %14, %16 : vector<8x384xf32>
    %cst_12 = arith.constant 5.000000e-01 : f32
    %18 = vector.broadcast %cst_12 : f32 to vector<8x384xf32>
    %19 = arith.mulf %18, %17 : vector<8x384xf32>
    %20 = math.tanh %19 : vector<8x384xf32>
    %cst_13 = arith.constant 1.000000e+00 : f32
    %21 = vector.broadcast %cst_13 : f32 to vector<8x384xf32>
    %22 = arith.addf %20, %21 : vector<8x384xf32>
    %cst_14 = arith.constant 5.000000e-01 : f32
    %23 = vector.broadcast %cst_14 : f32 to vector<8x384xf32>
    %24 = arith.mulf %23, %22 : vector<8x384xf32>
    %c0_15 = arith.constant 0 : index
    %c0_16 = arith.constant 0 : index
    %25 = vector.load %arg4[%c0_15, %c0_16] : memref<32x8xf32, #tpu.memory_space<vmem>>, vector<32x8xf32>
    %cst_17 = arith.constant dense<0.000000e+00> : vector<32x384xf32>
    %26 = tpu.matmul %25, %24, %cst_17 {dimension_numbers = #tpu.dot_dimension_numbers<[1], [0], [0], [1], [0, 0, 1, 1], [], []>} : vector<32x8xf32>, vector<8x384xf32>, vector<32x384xf32> -> vector<32x384xf32>
    %c40 = arith.constant 40 : index
    %c0_18 = arith.constant 0 : index
    %27 = vector.load %arg6[%c40, %c0_18] : memref<88x1xf32, #tpu.memory_space<vmem>>, vector<32x1xf32>
    %28 = vector.broadcast %27 : vector<32x1xf32> to vector<32x384xf32>
    %29 = arith.addf %26, %28 : vector<32x384xf32>
    %cst_19 = arith.constant 5.000000e-01 : f32
    %30 = vector.broadcast %cst_19 : f32 to vector<32x384xf32>
    %31 = arith.mulf %30, %29 : vector<32x384xf32>
    %32 = math.tanh %31 : vector<32x384xf32>
    %cst_20 = arith.constant 1.000000e+00 : f32
    %33 = vector.broadcast %cst_20 : f32 to vector<32x384xf32>
    %34 = arith.addf %32, %33 : vector<32x384xf32>
    %cst_21 = arith.constant 5.000000e-01 : f32
    %35 = vector.broadcast %cst_21 : f32 to vector<32x384xf32>
    %36 = arith.mulf %35, %34 : vector<32x384xf32>
    %c0_22 = arith.constant 0 : index
    %c0_23 = arith.constant 0 : index
    %37 = vector.load %arg5[%c0_22, %c0_23] : memref<16x32xf32, #tpu.memory_space<vmem>>, vector<16x32xf32>
    %cst_24 = arith.constant dense<0.000000e+00> : vector<16x384xf32>
    %38 = tpu.matmul %37, %36, %cst_24 {dimension_numbers = #tpu.dot_dimension_numbers<[1], [0], [0], [1], [0, 0, 1, 1], [], []>} : vector<16x32xf32>, vector<32x384xf32>, vector<16x384xf32> -> vector<16x384xf32>
    %c72 = arith.constant 72 : index
    %c0_25 = arith.constant 0 : index
    %39 = vector.load %arg6[%c72, %c0_25] : memref<88x1xf32, #tpu.memory_space<vmem>>, vector<16x1xf32>
    %40 = vector.broadcast %39 : vector<16x1xf32> to vector<16x384xf32>
    %41 = arith.addf %38, %40 : vector<16x384xf32>
    %cst_26 = arith.constant 5.000000e-01 : f32
    %42 = vector.broadcast %cst_26 : f32 to vector<16x384xf32>
    %43 = arith.mulf %42, %41 : vector<16x384xf32>
    %44 = math.tanh %43 : vector<16x384xf32>
    %cst_27 = arith.constant 1.000000e+00 : f32
    %45 = vector.broadcast %cst_27 : f32 to vector<16x384xf32>
    %46 = arith.addf %44, %45 : vector<16x384xf32>
    %cst_28 = arith.constant 5.000000e-01 : f32
    %47 = vector.broadcast %cst_28 : f32 to vector<16x384xf32>
    %48 = arith.mulf %47, %46 : vector<16x384xf32>
    %49 = arith.subf %48, %0 : vector<16x384xf32>
    %50 = arith.mulf %49, %49 : vector<16x384xf32>
    %cst_29 = arith.constant dense<0.000000e+00> : vector<384xf32>
    %51 = vector.multi_reduction <add>, %50, %cst_29 [0] : vector<16x384xf32> to vector<384xf32>
    %cst_30 = arith.constant 1.600000e+01 : f32
    %52 = vector.broadcast %cst_30 : f32 to vector<384xf32>
    %53 = arith.divf %51, %52 : vector<384xf32>
    %54 = vector.shape_cast %53 : vector<384xf32> to vector<1x384xf32>
    %c0_31 = arith.constant 0 : index
    %c0_32 = arith.constant 0 : index
    %55 = vector.load %arg7[%c0_31, %c0_32] : memref<1x384xf32, #tpu.memory_space<vmem>>, vector<1x384xf32>
    tpu.vector_store %arg7[%c0_31, %c0_32], %54 {strides = array<i32>} : memref<1x384xf32, #tpu.memory_space<vmem>>, vector<1x384xf32>,
    return
  }
  func.func @transform_0(%arg0: i32) -> (i32, i32) {
    %c0_i32 = arith.constant 0 : i32
    %c0_i32_0 = arith.constant 0 : i32
    return %c0_i32, %arg0 : i32, i32
  }
  func.func @transform_1(%arg0: i32) -> (i32, i32) {
    %c0_i32 = arith.constant 0 : i32
    %c0_i32_0 = arith.constant 0 : i32
    %c0_i32_1 = arith.constant 0 : i32
    return %c0_i32, %c0_i32_0 : i32, i32
  }
  func.func @transform_2(%arg0: i32) -> (i32, i32) {
    %c0_i32 = arith.constant 0 : i32
    %c0_i32_0 = arith.constant 0 : i32
    %c0_i32_1 = arith.constant 0 : i32
    return %c0_i32, %c0_i32_0 : i32, i32
  }
  func.func @transform_3(%arg0: i32) -> (i32, i32) {
    %c0_i32 = arith.constant 0 : i32
    %c0_i32_0 = arith.constant 0 : i32
    %c0_i32_1 = arith.constant 0 : i32
    return %c0_i32, %c0_i32_0 : i32, i32
  }
  func.func @transform_4(%arg0: i32) -> (i32, i32) {
    %c0_i32 = arith.constant 0 : i32
    %c0_i32_0 = arith.constant 0 : i32
    %c0_i32_1 = arith.constant 0 : i32
    return %c0_i32, %c0_i32_0 : i32, i32
  }
  func.func @transform_5(%arg0: i32) -> (i32, i32) {
    %c0_i32 = arith.constant 0 : i32
    %c0_i32_0 = arith.constant 0 : i32
    %c0_i32_1 = arith.constant 0 : i32
    return %c0_i32, %c0_i32_0 : i32, i32
  }
  func.func @transform_6(%arg0: i32) -> (i32, i32) {
    %c0_i32 = arith.constant 0 : i32
    %c0_i32_0 = arith.constant 0 : i32
    return %c0_i32, %arg0 : i32, i32
  }
}

</mosaic_0001>

<bundles_post_ra>
// kernel: tpu_custom_call.1
= control target key start
LH: loop header
LB: loop body
LE: loop exit
PB: predicated region body
PF: predicated region fallthrough
CT: control target
= control target key end

     0   :  { %vm58_vm0 = vcmask 130048   ;;  %v1178_v8 = vmov 0.0   ;;  %s1373_s0 = inlined_call_operand.vmem [shape: f32[16,384], index: 0, kind: input, shape index: {}]   ;;  %s1374_s1 = inlined_call_operand.vmem [shape: f32[32,16], index: 1, kind: input, shape index: {}]   ;;  %s1375_s2 = inlined_call_operand.vmem [shape: f32[8,32], index: 2, kind: input, shape index: {}]   ;;  %s1376_s3 = inlined_call_operand.vmem [shape: f32[32,8], index: 3, kind: input, shape index: {}]   ;;  %s1377_s4 = inlined_call_operand.vmem [shape: f32[16,32], index: 4, kind: input, shape index: {}]   ;;  %s1378_s5 = inlined_call_operand.vmem [shape: f32[88,1], index: 5, kind: input, shape index: {}]   ;;  %s1379_s6 = inlined_call_operand.hbm [shape: f32[1,384], index: 6, kind: output, shape index: {}]  }
   0x1   :  { %v1221_v0 = vld [vmem:[%s1373_s0 + $0x20] sm:$0xff]  ;;  %v1226_v1 = vld [vmem:[%s1373_s0 + $0x28] sm:$0xff]  ;;  %v1231_v2 = vld [vmem:[%s1373_s0 + $0x18] sm:$0xff]  ;;  %135 = vmatprep.mubr.f32.mxu0 %v1178_v8 }
   0x2   :  { %99 = vmatprep.subr.mxu0 %v1221_v0  ;;  %1043 = vmatprep.subr.mxu1 %v1226_v1  ;;  %v1238_v3 = vld [vmem:[%s1373_s0 + $0x8] sm:$0xff]  ;;  %v1243_v4 = vld [vmem:[%s1373_s0 + $0x10] sm:$0xff]  ;;  %v1248_v5 = vld [vmem:[%s1373_s0] sm:$0xff] }
   0x3   :  { %100 = vmatpush1.msra.mxu0 %v1231_v2  ;;  %1044 = vmatpush3.msra.mxu1 %v1226_v1  ;;  %v30_v6 = vld [vmem:[%s1374_s1] sm:$0xff]  ;;  %v31_v7 = vld [vmem:[%s1374_s1 + $0x8] sm:$0xff]  ;;  %v32_v9 = vld [vmem:[%s1374_s1 + $0x10] sm:$0xff] }
   0x4   :  { %101 = vmatprep.subr.mxu0 %v1238_v3  ;;  %1045 = vmatprep.subr.mxu1 %v1243_v4  ;;  %v37_v10 = vld [vmem:[%s1378_s5 + $0x18] sm:$0xff]  ;;  %v35_v11 = vld [vmem:[%s1378_s5 + $0x8] sm:$0xff] }
   0x5   :  { %102 = vmatpush1.msra.mxu0 %v1248_v5  ;;  %1046 = vmatpush3.msra.mxu1 %v1243_v4  ;;  %v33_v12 = vld [vmem:[%s1374_s1 + $0x18] sm:$0xff] }
   0x6   :  { %1047 = vmatprep.mubr.msk.f32.mxu1 %vm58_vm0, %v30_v6  ;;  %999 = vmatmul.mubr.msk.f32.vlgmr.msra.gmra.mxu0 %vm58_vm0, %v30_v6 }
   0x7   :  { %1048 = vmatmul.mubr.msk.f32.vlgmr.msra.gmra.mxu1 %vm58_vm0, %v31_v7  ;;  %141 = vmatprep.mubr.f32.mxu0 %v1178_v8 }
   0x8   :  { %1050 = vmatprep.mubr.msk.f32.mxu1 %vm58_vm0, %v32_v9 }
   0x9   :  { %11 = vsyncpa [#allocation3], 0  ;;  %v1179_v13 = vmov 0   ;;  %v36_v14 = vld [vmem:[%s1378_s5 + $0x10] sm:$0xff]  ;;  %v34_v15 = vld [vmem:[%s1378_s5] sm:$0xff]  ;;  %1053 = vmatprep.subr.mxu0 %v1178_v8  ;;  %vm1180_vm1 = vmmov 0  }
   0xa   :  { %1088 = vset.pattern.permute.xlu0 %v1179_v13  ;;  %1089 = vset.pattern.permute.xlu1 %v1179_v13  ;;  %v294_v16 = vld [vmem:[%s1378_s5 + $0x20] sm:$0xff]  ;;  %v463_v18 = vld [vmem:[%s1378_s5 + $0x38] sm:$0xff]  ;;  %v462_v19 = vld [vmem:[%s1378_s5 + $0x30] sm:$0xff]  ;;  %vm300_vm2 = vcmask 261120   ;;  %vm485_vm3 = vcmask 64512  }
   0xb   :  { %55 = vperm.xlu0 %1088, %v37_v10   ;;  %45 = vperm.xlu1 %1089, %v35_v11   ;;  %v464_v17 = vld [vmem:[%s1378_s5 + $0x40] sm:$0xff]  ;;  %v461_v20 = vld [vmem:[%s1378_s5 + $0x28] sm:$0xff]  ;;  %v723_v22 = vld [vmem:[%s1378_s5 + $0x50] sm:$0xff] }
   0xc   :  { %1000 = vmatmul.mubr.msk.f32.gmra.mxu0 %vm58_vm0, %v31_v7  ;;  %1051 = vmatmul.mubr.msk.f32.gmra.mxu1 %vm58_vm0, %v33_v12  ;;  %v722_v21 = vld [vmem:[%s1378_s5 + $0x48] sm:$0xff] }
   0xd   :  { %147 = vmatprep.mubr.f32.mxu0 %v1178_v8  ;;  %368 = vmatprep.mubr.f32.mxu1 %v1178_v8 }
   0xf   :  { %50 = vperm.xlu0 %1088, %v36_v14   ;;  %40 = vperm.xlu1 %1089, %v34_v15  }
  0x10   :  { %1001 = vmatmul.mubr.msk.f32.gmra.mxu0 %vm58_vm0, %v32_v9 }
  0x11   :  { %153 = vmatprep.mubr.f32.mxu0 %v1178_v8 }
  0x13   :  { %297 = vperm.xlu0 %1088, %v294_v16   ;;  %482 = vperm.xlu1 %1089, %v464_v17  }
  0x14   :  { %1002 = vmatmul.mubr.msk.f32.gmra.mxu0 %vm58_vm0, %v33_v12 }
  0x15   :  { %1061 = vmatprep.mubr.msk.f32.mxu0 %vm1180_vm1, %v1178_v8 }
  0x17   :  { %477 = vperm.xlu0 %1088, %v463_v18   ;;  %472 = vperm.xlu1 %1089, %v462_v19  }
  0x1b   :  { %467 = vperm.xlu0 %1088, %v461_v20   ;;  %726 = vperm.xlu1 %1089, %v722_v21  }
  0x1f   :  { %731 = vperm.xlu0 %1088, %v723_v22  }
  0x86   :  { %v46_v23 = vpop.permute.xlu1 %45  ;;  %v56_v24 = vpop.permute.xlu0 %55 }
  0x8a   :  { %v41_v27 = vpop.permute.xlu1 %40  ;;  %v51_v35 = vpop.permute.xlu0 %50 }
  0xc6   :  { %v137_v25 = vpop.f32.mrf.mxu0 }
  0xc7   :  { %v1049_v26 = vpop.f32.mrf.mxu1  ;;  %v138_v54 = vadd.f32 %v137_v25, %v41_v27 }
  0xc8   :  { %v232_v28 = vadd.f32 %v1049_v26, %v46_v23  ;;  %v139_v29 = vpop.f32.mrf.mxu0 }
  0xc9   :  { %v226_v30 = vpop.f32.mrf.mxu1  ;;  %v140_v51 = vadd.f32 %v139_v29, %v41_v27  ;;  %v245_v62 = vmul.f32 0.5, %v138_v54 }
  0xca   :  { %v227_v31 = vadd.f32 %v226_v30, %v41_v27  ;;  %v250_v32 = vmul.f32 0.5, %v232_v28 }
  0xcb   :  { %v246_v60 = vmul.f32 0.5, %v140_v51 }
  0xcc   :  { %v143_v33 = vpop.f32.mrf.mxu0  ;;  %v1052_v34 = vpop.f32.mrf.mxu1  ;;  %v247_v36 = vmul.f32 0.5, %v227_v31  ;;  %1090 = vtanh.f32 %v250_v32 }
  0xcd   :  { %v242_v37 = vadd.f32 %v1052_v34, %v56_v24  ;;  %v144_v49 = vadd.f32 %v143_v33, %v46_v23 }
  0xce   :  { %v145_v38 = vpop.f32.mrf.mxu0  ;;  %v236_v39 = vpop.f32.mrf.mxu1  ;;  %1092 = vtanh.f32 %v247_v36 }
  0xcf   :  { %v146_v40 = vadd.f32 %v145_v38, %v46_v23  ;;  %v237_v41 = vadd.f32 %v236_v39, %v51_v35  ;;  %v256_v42 = vmul.f32 0.5, %v242_v37  ;;  %v248_v59 = vmul.f32 0.5, %v144_v49 }
  0xd0   :  { %v149_v43 = vpop.f32.mrf.mxu0 }
  0xd1   :  { %v253_v44 = vmul.f32 0.5, %v237_v41  ;;  %1094 = vtanh.f32 %v256_v42  ;;  %v150_v45 = vadd.f32 %v149_v43, %v51_v35  ;;  %v249_v47 = vmul.f32 0.5, %v146_v40  ;;  %v457_v43 = vld [vmem:[%s1376_s3] sm:$0xff] }
  0xd2   :  { %v151_v46 = vpop.f32.mrf.mxu0 }
  0xd3   :  { %v152_v48 = vadd.f32 %v151_v46, %v51_v35  ;;  %1096 = vtanh.f32 %v253_v44  ;;  %v251_v55 = vmul.f32 0.5, %v150_v45  ;;  %v298_v44 = vpop.permute.xlu0 %297 }
  0xd4   :  { %v155_v50 = vpop.f32.mrf.mxu0  ;;  %1098 = vtanh.f32 %v249_v47 }
  0xd5   :  { %v252_v52 = vmul.f32 0.5, %v152_v48  ;;  %v156_v53 = vadd.f32 %v155_v50, %v56_v24 }
  0xd6   :  { %v157_v56 = vpop.f32.mrf.mxu0 }
  0xd7   :  { %v254_v57 = vmul.f32 0.5, %v156_v53  ;;  %v158_v58 = vadd.f32 %v157_v56, %v56_v24  ;;  %1100 = vtanh.f32 %v252_v52  ;;  %v293_v24 = vld [vmem:[%s1375_s2] sm:$0xff] }
  0xd9   :  { %1102 = vtanh.f32 %v254_v57  ;;  %v255_v61 = vmul.f32 0.5, %v158_v58  ;;  %v1091_v63 = vpop.eup %1090  ;;  %v458_v58 = vld [vmem:[%s1376_s3 + $0x8] sm:$0xff] }
  0xda   :  { %1104 = vtanh.f32 %v251_v55  ;;  %v274_v9 = vadd.f32 1.0, %v1091_v63 }
  0xdb   :  { %1106 = vtanh.f32 %v255_v61  ;;  %v1093_v6 = vpop.eup %1092 }
  0xdc   :  { %1108 = vtanh.f32 %v248_v59  ;;  %v271_v12 = vadd.f32 1.0, %v1093_v6  ;;  %v286_v16 = vmul.f32 0.5, %v274_v9  ;;  %v459_v59 = vld [vmem:[%s1376_s3 + $0x10] sm:$0xff] }
  0xdd   :  { %1110 = vtanh.f32 %v246_v60  ;;  %v460_v60 = vld [vmem:[%s1376_s3 + $0x18] sm:$0xff] }
  0xde   :  { %1112 = vtanh.f32 %v245_v62  ;;  %v1095_v7 = vpop.eup %1094  ;;  %v283_v20 = vmul.f32 0.5, %v271_v12  ;;  %v478_v12 = vpop.permute.xlu0 %477 }
  0xdf   :  { %v280_v10 = vadd.f32 1.0, %v1095_v7 }
  0xe0   :  { %v1097_v11 = vpop.eup %1096 }
  0xe1   :  { %v292_v13 = vmul.f32 0.5, %v280_v10  ;;  %v277_v14 = vadd.f32 1.0, %v1097_v11  ;;  %v1099_v15 = vpop.eup %1098  ;;  %v1352_v10 = vld [vmem:[%s1377_s4] sm:$0xff]  ;;  %v483_v11 = vpop.permute.xlu1 %482 }
  0xe2   :  { %v273_v32 = vadd.f32 1.0, %v1099_v15 }
  0xe3   :  { %v289_v17 = vmul.f32 0.5, %v277_v14  ;;  %1054 = vmatpush3.msra.mxu0 %v292_v13 }
  0xe4   :  { %v1101_v18 = vpop.eup %1100  ;;  %1055 = vmatprep.subr.mxu0 %v1178_v8  ;;  %v285_v39 = vmul.f32 0.5, %v273_v32 }
  0xe5   :  { %1056 = vmatpush3.msra.mxu0 %v289_v17  ;;  %v276_v27 = vadd.f32 1.0, %v1101_v18  ;;  %v473_v14 = vpop.permute.xlu1 %472  ;;  %v468_v17 = vpop.permute.xlu0 %467 }
  0xe6   :  { %v1103_v19 = vpop.eup %1102  ;;  %1057 = vmatprep.subr.mxu0 %v1178_v8 }
  0xe7   :  { %v1105_v21 = vpop.eup %1104  ;;  %v278_v23 = vadd.f32 1.0, %v1103_v19  ;;  %1058 = vmatpush3.msra.mxu0 %v286_v16  ;;  %v288_v35 = vmul.f32 0.5, %v276_v27 }
  0xe8   :  { %v1107_v22 = vpop.eup %1106  ;;  %1059 = vmatprep.subr.mxu0 %v1178_v8  ;;  %v275_v29 = vadd.f32 1.0, %v1105_v21 }
  0xe9   :  { %v1109_v25 = vpop.eup %1108  ;;  %v279_v26 = vadd.f32 1.0, %v1107_v22  ;;  %1060 = vmatpush3.msra.mxu0 %v283_v20  ;;  %v290_v34 = vmul.f32 0.5, %v278_v23 }
  0xea   :  { %v1111_v28 = vpop.eup %1110  ;;  %1062 = vmatmul.mubr.msk.f32.vlgmr.msra.gmra.mxu0 %vm300_vm2, %v293_v24  ;;  %v272_v33 = vadd.f32 1.0, %v1109_v25  ;;  %v287_v38 = vmul.f32 0.5, %v275_v29 }
  0xeb   :  { %v1113_v30 = vpop.eup %1112  ;;  %v291_v31 = vmul.f32 0.5, %v279_v26  ;;  %v270_v36 = vadd.f32 1.0, %v1111_v28  ;;  %1066 = vmatprep.mubr.msk.f32.mxu0 %vm485_vm3, %v457_v43 }
  0xec   :  { %v269_v37 = vadd.f32 1.0, %v1113_v30  ;;  %v284_v40 = vmul.f32 0.5, %v272_v33 }
  0xed   :  { %328 = vmatprep.subr.mxu1 %v291_v31  ;;  %v282_v41 = vmul.f32 0.5, %v270_v36 }
  0xee   :  { %329 = vmatpush1.msra.mxu1 %v290_v34  ;;  %v281_v42 = vmul.f32 0.5, %v269_v37 }
  0xef   :  { %330 = vmatprep.subr.mxu1 %v288_v35 }
  0xf0   :  { %331 = vmatpush1.msra.mxu1 %v287_v38 }
  0xf1   :  { %332 = vmatprep.subr.mxu1 %v285_v39 }
  0xf2   :  { %333 = vmatpush1.msra.mxu1 %v284_v40 }
  0xf3   :  { %334 = vmatprep.subr.mxu1 %v282_v41 }
  0xf4   :  { %335 = vmatpush1.msra.mxu1 %v281_v42 }
  0xf5   :  { %1007 = vmatmul.mubr.msk.f32.vlgmr.msra.gmra.mxu1 %vm300_vm2, %v293_v24 }
  0xf6   :  { %562 = vmatprep.mubr.f32.mxu1 %v1178_v8 }
 0x1aa   :  { %v441_v45 = vpop.f32.mrf.mxu0 }
 0x1ab   :  { %v442_v46 = vadd.f32 %v441_v45, %v298_v44 }
 0x1ac   :  { %v1063_v47 = vpop.f32.mrf.mxu0 }
 0x1ad   :  { %v447_v48 = vmul.f32 0.5, %v442_v46 }
 0x1af   :  { %1114 = vtanh.f32 %v447_v48 }
 0x1b5   :  { %v370_v49 = vpop.f32.mrf.mxu1 }
 0x1b6   :  { %v371_v50 = vadd.f32 %v370_v49, %v298_v44 }
 0x1b7   :  { %v372_v51 = vpop.f32.mrf.mxu1 }
 0x1b8   :  { %v445_v52 = vmul.f32 0.5, %v371_v50  ;;  %v373_v53 = vadd.f32 %v372_v51, %v298_v44 }
 0x1ba   :  { %1116 = vtanh.f32 %v445_v52  ;;  %v446_v54 = vmul.f32 0.5, %v373_v53 }
 0x1bc   :  { %1118 = vtanh.f32 %v446_v54  ;;  %v1115_v55 = vpop.eup %1114 }
 0x1bd   :  { %v453_v56 = vadd.f32 1.0, %v1115_v55 }
 0x1bf   :  { %v456_v57 = vmul.f32 0.5, %v453_v56 }
 0x1c1   :  { %1064 = vmatprep.subr.mxu0 %v456_v57 }
 0x1c2   :  { %1065 = vmatpush3.msra.mxu0 %v456_v57 }
 0x1c3   :  { %1067 = vmatmul.mubr.msk.f32.vlgmr.msra.gmra.mxu0 %vm485_vm3, %v458_v58 }
 0x1c4   :  { %1069 = vmatprep.mubr.msk.f32.mxu0 %vm485_vm3, %v459_v59 }
 0x1c7   :  { %v1117_v61 = vpop.eup %1116  ;;  %1070 = vmatmul.mubr.msk.f32.gmra.mxu0 %vm485_vm3, %v460_v60 }
 0x1c8   :  { %v451_v63 = vadd.f32 1.0, %v1117_v61  ;;  %804 = vmatprep.mubr.f32.mxu0 %v1178_v8 }
 0x1c9   :  { %v1119_v62 = vpop.eup %1118 }
 0x1ca   :  { %v452_v6 = vadd.f32 1.0, %v1119_v62  ;;  %v454_v9 = vmul.f32 0.5, %v451_v63  ;;  %v721_v63 = vld [vmem:[%s1377_s4 + $0x8] sm:$0xff]  ;;  %s1182_s4 = smov [#allocation2]  }
 0x1cb   :  { %s991_s23 = sshll.u32 %s1182_s4, 4  ;;  %s992_s23 = int_to_ptr.vmem [resolvable:$true] %s991_s23 }
 0x1cc   :  { %v455_v7 = vmul.f32 0.5, %v452_v6  ;;  %s1156_s1 = scalar_lea.vmem %s992_s23, 48  ;;  %s1160_s24 = scalar_lea.vmem %s992_s23, 64 }
 0x1cd   :  { %p1157_p0 = scmp.ne.s32.totalorder %s992_s23, %s1156_s1  ;;  %p1161_p1 = scmp.lt.s32.totalorder %s992_s23, %s992_s23 }
 0x1ce   :  { %528 = vmatprep.subr.mxu1 %v455_v7  ;;  %p1162_p2 = scmp.lt.s32.totalorder %s1160_s24, %s1156_s1 }
 0x1cf   :  { %529 = vmatpush1.msra.mxu1 %v454_v9 }
 0x1d0   :  { %1009 = vmatmul.mubr.msk.f32.vlgmr.msra.gmra.mxu1 %vm485_vm3, %v457_v43  ;;  %p1163_p3 = por %p1162_p2, %p1161_p1 }
 0x1d1   :  { %568 = vmatprep.mubr.f32.mxu1 %v1178_v8 }
 0x1d2   :  { %p1164_p4 = pnand %p1163_p3, %p1157_p0 }
 0x1d4   :  { %1010 = vmatmul.mubr.msk.f32.gmra.mxu1 %vm485_vm3, %v458_v58 }
 0x1d5   :  { %574 = vmatprep.mubr.f32.mxu1 %v1178_v8 }
 0x1d8   :  { %1011 = vmatmul.mubr.msk.f32.gmra.mxu1 %vm485_vm3, %v459_v59 }
 0x1d9   :  { %580 = vmatprep.mubr.f32.mxu1 %v1178_v8 }
 0x1dc   :  { %1012 = vmatmul.mubr.msk.f32.gmra.mxu1 %vm485_vm3, %v460_v60 }
 0x1dd   :  { %1080 = vmatprep.mubr.msk.f32.mxu1 %vm300_vm2, %v1352_v10 }
 0x283   :  { %v1068_v13 = vpop.f32.mrf.mxu0 }
 0x284   :  { %v659_v15 = vadd.f32 %v1068_v13, %v473_v14 }
 0x285   :  { %v653_v16 = vpop.f32.mrf.mxu0 }
 0x286   :  { %v654_v18 = vadd.f32 %v653_v16, %v468_v17  ;;  %v677_v21 = vmul.f32 0.5, %v659_v15 }
 0x287   :  { %v1071_v19 = vpop.f32.mrf.mxu0 }
 0x288   :  { %v669_v20 = vadd.f32 %v1071_v19, %v483_v11  ;;  %v674_v25 = vmul.f32 0.5, %v654_v18 }
 0x289   :  { %v663_v22 = vpop.f32.mrf.mxu0 }
 0x28a   :  { %v683_v23 = vmul.f32 0.5, %v669_v20  ;;  %v664_v24 = vadd.f32 %v663_v22, %v478_v12 }
 0x28c   :  { %1120 = vtanh.f32 %v683_v23  ;;  %v680_v26 = vmul.f32 0.5, %v664_v24 }
 0x28d   :  { %1122 = vtanh.f32 %v677_v21 }
 0x28e   :  { %1124 = vtanh.f32 %v680_v26 }
 0x28f   :  { %1126 = vtanh.f32 %v674_v25 }
 0x290   :  { %v564_v27 = vpop.f32.mrf.mxu1 }
 0x291   :  { %v565_v48 = vadd.f32 %v564_v27, %v468_v17 }
 0x292   :  { %v566_v28 = vpop.f32.mrf.mxu1 }
 0x293   :  { %v567_v44 = vadd.f32 %v566_v28, %v468_v17  ;;  %v672_v60 = vmul.f32 0.5, %v565_v48 }
 0x294   :  { %v570_v29 = vpop.f32.mrf.mxu1 }
 0x295   :  { %v571_v41 = vadd.f32 %v570_v29, %v473_v14  ;;  %v673_v58 = vmul.f32 0.5, %v567_v44 }
 0x296   :  { %v572_v30 = vpop.f32.mrf.mxu1 }
 0x297   :  { %v573_v31 = vadd.f32 %v572_v30, %v473_v14  ;;  %v675_v55 = vmul.f32 0.5, %v571_v41 }
 0x298   :  { %v576_v32 = vpop.f32.mrf.mxu1 }
 0x299   :  { %v1121_v33 = vpop.eup %1120  ;;  %v577_v34 = vadd.f32 %v576_v32, %v478_v12  ;;  %v676_v37 = vmul.f32 0.5, %v573_v31 }
 0x29a   :  { %v578_v35 = vpop.f32.mrf.mxu1  ;;  %v1123_v36 = vpop.eup %1122  ;;  %v707_v39 = vadd.f32 1.0, %v1121_v33 }
 0x29b   :  { %v579_v38 = vadd.f32 %v578_v35, %v478_v12  ;;  %v1125_v40 = vpop.eup %1124  ;;  %v678_v49 = vmul.f32 0.5, %v577_v34  ;;  %v701_v52 = vadd.f32 1.0, %v1123_v36  ;;  %1128 = vtanh.f32 %v676_v37  ;;  %v732_v33 = vpop.permute.xlu0 %731 }
 0x29c   :  { %v582_v42 = vpop.f32.mrf.mxu1  ;;  %v1127_v43 = vpop.eup %1126  ;;  %v719_v47 = vmul.f32 0.5, %v707_v39  ;;  %v704_v51 = vadd.f32 1.0, %v1125_v40 }
 0x29d   :  { %v679_v45 = vmul.f32 0.5, %v579_v38  ;;  %v583_v46 = vadd.f32 %v582_v42, %v483_v11  ;;  %v698_v57 = vadd.f32 1.0, %v1127_v43  ;;  %v713_v61 = vmul.f32 0.5, %v701_v52  ;;  %v727_v34 = vpop.permute.xlu1 %726 }
 0x29e   :  { %v584_v50 = vpop.f32.mrf.mxu1  ;;  %1072 = vmatprep.subr.mxu1 %v719_v47  ;;  %v716_v56 = vmul.f32 0.5, %v704_v51 }
 0x29f   :  { %v681_v53 = vmul.f32 0.5, %v583_v46  ;;  %v585_v54 = vadd.f32 %v584_v50, %v483_v11  ;;  %1130 = vtanh.f32 %v679_v45  ;;  %1073 = vmatpush3.msra.mxu1 %v719_v47  ;;  %v710_v62 = vmul.f32 0.5, %v698_v57 }
 0x2a0   :  { %1074 = vmatprep.subr.mxu1 %v716_v56 }
 0x2a1   :  { %1132 = vtanh.f32 %v681_v53  ;;  %v682_v59 = vmul.f32 0.5, %v585_v54  ;;  %1075 = vmatpush3.msra.mxu1 %v716_v56 }
 0x2a2   :  { %1134 = vtanh.f32 %v678_v49  ;;  %1076 = vmatprep.subr.mxu1 %v713_v61 }
 0x2a3   :  { %1136 = vtanh.f32 %v682_v59  ;;  %1077 = vmatpush3.msra.mxu1 %v713_v61 }
 0x2a4   :  { %1138 = vtanh.f32 %v675_v55  ;;  %1078 = vmatprep.subr.mxu1 %v710_v62 }
 0x2a5   :  { %1140 = vtanh.f32 %v673_v58  ;;  %1079 = vmatpush3.msra.mxu1 %v710_v62 }
 0x2a6   :  { %1142 = vtanh.f32 %v672_v60  ;;  %1081 = vmatmul.mubr.msk.f32.vlgmr.msra.gmra.mxu1 %vm300_vm2, %v721_v63 }
 0x2a8   :  { %v1129_v6 = vpop.eup %1128 }
 0x2a9   :  { %v700_v21 = vadd.f32 1.0, %v1129_v6 }
 0x2ab   :  { %v712_v28 = vmul.f32 0.5, %v700_v21 }
 0x2ac   :  { %v1131_v7 = vpop.eup %1130 }
 0x2ad   :  { %v703_v16 = vadd.f32 1.0, %v1131_v7 }
 0x2ae   :  { %v1133_v9 = vpop.eup %1132 }
 0x2af   :  { %v1135_v11 = vpop.eup %1134  ;;  %v705_v13 = vadd.f32 1.0, %v1133_v9  ;;  %v715_v24 = vmul.f32 0.5, %v703_v16 }
 0x2b0   :  { %v1137_v12 = vpop.eup %1136  ;;  %v702_v18 = vadd.f32 1.0, %v1135_v11 }
 0x2b1   :  { %v1139_v14 = vpop.eup %1138  ;;  %v706_v15 = vadd.f32 1.0, %v1137_v12  ;;  %v717_v23 = vmul.f32 0.5, %v705_v13 }
 0x2b2   :  { %v1141_v17 = vpop.eup %1140  ;;  %v699_v22 = vadd.f32 1.0, %v1139_v14  ;;  %v714_v27 = vmul.f32 0.5, %v702_v18 }
 0x2b3   :  { %v1143_v19 = vpop.eup %1142  ;;  %v718_v20 = vmul.f32 0.5, %v706_v15  ;;  %v697_v25 = vadd.f32 1.0, %v1141_v17 }
 0x2b4   :  { %v696_v26 = vadd.f32 1.0, %v1143_v19  ;;  %v711_v29 = vmul.f32 0.5, %v699_v22 }
 0x2b5   :  { %764 = vmatprep.subr.mxu0 %v718_v20  ;;  %v709_v30 = vmul.f32 0.5, %v697_v25 }
 0x2b6   :  { %765 = vmatpush1.msra.mxu0 %v717_v23  ;;  %v708_v31 = vmul.f32 0.5, %v696_v26 }
 0x2b7   :  { %766 = vmatprep.subr.mxu0 %v715_v24 }
 0x2b8   :  { %767 = vmatpush1.msra.mxu0 %v714_v27 }
 0x2b9   :  { %768 = vmatprep.subr.mxu0 %v712_v28 }
 0x2ba   :  { %769 = vmatpush1.msra.mxu0 %v711_v29 }
 0x2bb   :  { %770 = vmatprep.subr.mxu0 %v709_v30 }
 0x2bc   :  { %771 = vmatpush1.msra.mxu0 %v708_v31 }
 0x2bd   :  { %1017 = vmatmul.mubr.msk.f32.vlgmr.msra.gmra.mxu0 %vm300_vm2, %v1352_v10 }
 0x2be   :  { %810 = vmatprep.mubr.f32.mxu0 %v1178_v8 }
 0x2c1   :  { %1018 = vmatmul.mubr.msk.f32.gmra.mxu0 %vm300_vm2, %v721_v63 }
 0x366   :  { %v1082_v32 = vpop.f32.mrf.mxu1 }
 0x367   :  { %v889_v35 = vadd.f32 %v1082_v32, %v732_v33 }
 0x368   :  { %v883_v36 = vpop.f32.mrf.mxu1 }
 0x369   :  { %v884_v37 = vadd.f32 %v883_v36, %v727_v34  ;;  %v897_v39 = vmul.f32 0.5, %v889_v35  ;;  %v960_v36 = vlaneseq }
 0x36b   :  { %v894_v38 = vmul.f32 0.5, %v884_v37  ;;  %vm982_vm4 = vcmp.lt.s32.totalorder %v960_v36, 384 }
 0x36d   :  { %1144 = vtanh.f32 %v894_v38 }
 0x36e   :  { %1146 = vtanh.f32 %v897_v39 }
 0x37a   :  { %v1145_v40 = vpop.eup %1144 }
 0x37b   :  { %v1147_v43 = vpop.eup %1146  ;;  %v906_v10 = vadd.f32 1.0, %v1145_v40 }
 0x37c   :  { %v909_v47 = vadd.f32 1.0, %v1147_v43 }
 0x37d   :  { %v806_v41 = vpop.f32.mrf.mxu0  ;;  %v912_v51 = vmul.f32 0.5, %v906_v10 }
 0x37e   :  { %v807_v42 = vadd.f32 %v806_v41, %v727_v34  ;;  %v915_v54 = vmul.f32 0.5, %v909_v47 }
 0x37f   :  { %v808_v44 = vpop.f32.mrf.mxu0  ;;  %v918_v56 = vsub.f32 %v912_v51, %v1243_v4 }
 0x380   :  { %v892_v45 = vmul.f32 0.5, %v807_v42  ;;  %v809_v8 = vadd.f32 %v808_v44, %v727_v34  ;;  %v921_v57 = vsub.f32 %v915_v54, %v1226_v1  ;;  %v961_v42 = vshrl.u32 %v960_v36, 7 }
 0x381   :  { %v812_v46 = vpop.f32.mrf.mxu0  ;;  %v924_v58 = vmul.f32 %v918_v56, %v918_v56 }
 0x382   :  { %1148 = vtanh.f32 %v892_v45  ;;  %v893_v48 = vmul.f32 0.5, %v809_v8  ;;  %v813_v49 = vadd.f32 %v812_v46, %v732_v33  ;;  %v927_v59 = vmul.f32 %v921_v57, %v921_v57 }
 0x383   :  { %v814_v50 = vpop.f32.mrf.mxu0 }
 0x384   :  { %1150 = vtanh.f32 %v893_v48  ;;  %v895_v52 = vmul.f32 0.5, %v813_v49  ;;  %v815_v53 = vadd.f32 %v814_v50, %v732_v33  ;;  %v942_v61 = vadd.f32 %v927_v59, %v924_v58 }
 0x385   :  { %v1181_v33 = vmov 1966171168  }
 0x386   :  { %1152 = vtanh.f32 %v895_v52  ;;  %v896_v55 = vmul.f32 0.5, %v815_v53  ;;  %v943_v11 = vrot.slane %v942_v61, 4 }
 0x388   :  { %1154 = vtanh.f32 %v896_v55  ;;  %v944_v17 = vadd.f32 %v943_v11, %v942_v61 }
 0x38a   :  { %v945_v23 = vrot.slane %v944_v17, 2 }
 0x38c   :  { %v946_v30 = vadd.f32 %v945_v23, %v944_v17 }
 0x38e   :  { %v947_v35 = vrot.slane %v946_v30, 1 }
 0x38f   :  { %v1149_v60 = vpop.eup %1148 }
 0x390   :  { %v904_v62 = vadd.f32 1.0, %v1149_v60  ;;  %v948_v41 = vadd.f32 %v947_v35, %v946_v30 }
 0x391   :  { %v1151_v63 = vpop.eup %1150 }
 0x392   :  { %v910_v6 = vmul.f32 0.5, %v904_v62  ;;  %v905_v7 = vadd.f32 1.0, %v1151_v63  ;;  %v952_v45 = vmul.f32 0.0625, %v948_v41 }
 0x393   :  { %v1153_v9 = vpop.eup %1152 }
 0x394   :  { %v911_v12 = vmul.f32 0.5, %v905_v7  ;;  %v907_v13 = vadd.f32 1.0, %v1153_v9  ;;  %v916_v15 = vsub.f32 %v910_v6, %v1248_v5 }
 0x395   :  { %v1155_v14 = vpop.eup %1154 }
 0x396   :  { %v913_v16 = vmul.f32 0.5, %v907_v13  ;;  %v908_v4 = vadd.f32 1.0, %v1155_v14  ;;  %v917_v1 = vsub.f32 %v911_v12, %v1238_v3  ;;  %v922_v20 = vmul.f32 %v916_v15, %v916_v15 }
 0x397   :  { %v958_v3 = vunpack.c.l.s4 %v1181_v33 }
 0x398   :  { %v919_v18 = vsub.f32 %v913_v16, %v1231_v2  ;;  %v914_v19 = vmul.f32 0.5, %v908_v4  ;;  %v923_v24 = vmul.f32 %v917_v1, %v917_v1 }
 0x39a   :  { %v925_v21 = vmul.f32 %v919_v18, %v919_v18  ;;  %v920_v22 = vsub.f32 %v914_v19, %v1221_v0  ;;  %v959_v0 = vunpack.c.0.s8 %v958_v3 }
 0x39c   :  { %v928_v25 = vadd.f32 %v925_v21, %v922_v20  ;;  %v926_v26 = vmul.f32 %v920_v22, %v920_v22  ;;  %v962_v8 = vsub.s32 %v959_v0, %v961_v42 }
 0x39e   :  { %v929_v27 = vrot.slane %v928_v25, 4  ;;  %v935_v28 = vadd.f32 %v926_v26, %v923_v24  ;;  %v970_v48 = vrot.slane %v952_v45, %v962_v8 }
 0x3a0   :  { %v930_v29 = vadd.f32 %v929_v27, %v928_v25  ;;  %v936_v5 = vrot.slane %v935_v28, 4 }
 0x3a2   :  { %v931_v31 = vrot.slane %v930_v29, 2  ;;  %v937_v32 = vadd.f32 %v936_v5, %v935_v28 }
 0x3a4   :  { %v932_v34 = vadd.f32 %v931_v31, %v930_v29  ;;  %v938_v2 = vrot.slane %v937_v32, 2 }
 0x3a6   :  { %v939_v37 = vadd.f32 %v938_v2, %v937_v32  ;;  %v933_v38 = vrot.slane %v932_v34, 1 }
 0x3a8   :  { %v934_v39 = vadd.f32 %v933_v38, %v932_v34  ;;  %v940_v40 = vrot.slane %v939_v37, 1 }
 0x3aa   :  { %v941_v43 = vadd.f32 %v940_v40, %v939_v37  ;;  %v950_v44 = vmul.f32 0.0625, %v934_v39 }
 0x3ac   :  { %v951_v10 = vmul.f32 0.0625, %v941_v43 }
 0x3ae   :  { %v956_v46 = vcombine.low %v950_v44, %v951_v10 }
 0x3b0   :  { %v963_v47 = vrot.slane %v956_v46, %v962_v8 }
 0x3b2   :  { %v971_v49 = vcombine.low %v963_v47, %v970_v48 }
 0x3b4   :  { %v978_v50 = vrot.slane %v971_v49, %v962_v8 }
 0x3b6   :  { %984 = vst.msk [vmem:[#allocation2] sm:$0x7] %vm982_vm4, %v978_v50 }
 0x3b7   :  { %1167 = shalt.err (!%p1164_p4)
}
 0x3b8   :  { %994 = dma.vmem_to_hbm [thread:$0]  %s992_s23, 48, %s1379_s6, [#allocation3]  }
 0x3b9   :  { %1176 = dma.done.wait [#allocation3], 48  }
 0x3ba   :  { %1177 = vsyncadd [#allocation3], 4294967248 }
 0x3bb   :  { %998 = vsyncpa [#allocation3], 1 }

</bundles_post_ra>
